<compile_context>
chip_gen: v7x
topology: tpu7x:2x2x1
jax: 0.10.0
libtpu: 0.0.40
codegen_flags: <defaults>
</compile_context>

<pallas_src>
import functools

import jax
import jax.numpy as jnp
from jax.experimental import pallas as pl
from jax.experimental.pallas import tpu as pltpu


def _round_up(x, m):
    return ((x + m - 1) // m) * m


# -----------------------------------------------------------------------------
# Kernels
# -----------------------------------------------------------------------------
def _attn_kernel_single(enc_ref, dec_ref, out_ref, *, s_enc, mm_dtype, need_mask):
    """Fast path: S_enc fits in a single tile -> plain (non-online) softmax."""
    enc = enc_ref[...]                                   # (Bt, Tk, Hp)
    dec = dec_ref[...]                                   # (Bt, Td, Hp)
    enc_mm = enc.astype(mm_dtype)
    dec_mm = dec.astype(mm_dtype)

    # scores[b, d, e] = sum_h dec[b,d,h] * enc[b,e,h]   (no transposes)
    s = jnp.einsum("bdh,beh->bde", dec_mm, enc_mm,
                   preferred_element_type=jnp.float32)   # (Bt, Td, Tk)
    if need_mask:  # padded encoder rows -> -inf before softmax
        e_idx = jax.lax.broadcasted_iota(jnp.int32, s.shape, 2)
        s = jnp.where(e_idx < s_enc, s, -jnp.inf)

    m = jnp.max(s, axis=-1, keepdims=True)
    p = jnp.exp(s - m)
    l = jnp.sum(p, axis=-1, keepdims=True)
    ctx = jnp.einsum("bde,beh->bdh", p.astype(mm_dtype), enc_mm,
                     preferred_element_type=jnp.float32)
    # Exact divide: runs once per output tile -> negligible cost, exact parity.
    out_ref[...] = (ctx / l).astype(out_ref.dtype)


def _attn_kernel_flash(enc_ref, dec_ref, out_ref, m_sc, l_sc, acc_sc, *,
                       s_enc, tk, mm_dtype, need_mask):
    """Multi encoder-tile path: flash-style online softmax over S_enc."""
    k = pl.program_id(2)

    @pl.when(k == 0)
    def _():
        m_sc[...] = jnp.full_like(m_sc, -jnp.inf)
        l_sc[...] = jnp.zeros_like(l_sc)
        acc_sc[...] = jnp.zeros_like(acc_sc)

    enc = enc_ref[...]                                   # (Bt, Tk, Hp)
    dec = dec_ref[...]                                   # (Bt, Td, Hp)
    enc_mm = enc.astype(mm_dtype)
    dec_mm = dec.astype(mm_dtype)

    s = jnp.einsum("bdh,beh->bde", dec_mm, enc_mm,
                   preferred_element_type=jnp.float32)   # (Bt, Td, Tk)
    if need_mask:
        e_idx = k * tk + jax.lax.broadcasted_iota(jnp.int32, s.shape, 2)
        s = jnp.where(e_idx < s_enc, s, -jnp.inf)

    m_prev = m_sc[...]
    m_new = jnp.maximum(m_prev, jnp.max(s, axis=-1, keepdims=True))
    alpha = jnp.exp(m_prev - m_new)                      # rescale old stats
    p = jnp.exp(s - m_new)

    l_sc[...] = alpha * l_sc[...] + jnp.sum(p, axis=-1, keepdims=True)
    acc_sc[...] = alpha * acc_sc[...] + jnp.einsum(
        "bde,beh->bdh", p.astype(mm_dtype), enc_mm,
        preferred_element_type=jnp.float32)
    m_sc[...] = m_new

    @pl.when(k == pl.num_programs(2) - 1)
    def _():
        out_ref[...] = (acc_sc[...] / l_sc[...]).astype(out_ref.dtype)


# -----------------------------------------------------------------------------
# Wrapper
# -----------------------------------------------------------------------------
def attention(enc_output, dec_output, *, use_bf16_matmul=False,
              _tk_override=None, _td_override=None):
    """enc_output: [B, S_enc, H], dec_output: [B, S_dec, H] -> [B, S_dec, H]."""
    B, S_enc, H = enc_output.shape
    Bd, S_dec, Hd = dec_output.shape
    assert B == Bd and H == Hd

    dtype = enc_output.dtype
    isize = jnp.dtype(dtype).itemsize
    sub = {4: 8, 2: 16, 1: 32}.get(isize, 8)   # dtype-native sublane multiple
    Hp = _round_up(H, 128)                     # lane-dense hidden dim

    # Generation-aware VMEM budgeting (v7x: 64 MiB/TC; v5e/v6e: 128 MiB).
    try:
        vmem_cap = getattr(pltpu.get_tpu_info(), "vmem_capacity_bytes", None)
    except Exception:  # pragma: no cover - conservative fallback
        vmem_cap = None
    if vmem_cap is None or vmem_cap <= 64 * 1024 * 1024:
        budget, vmem_limit, tk_target = 16 << 20, 40 << 20, 512
    else:
        budget, vmem_limit, tk_target = 24 << 20, 64 << 20, 1024
    td_target = 256

    def pick_tile(extent, target):
        if extent >= target:
            return target
        return _round_up(extent, sub)

    td = _td_override if _td_override is not None else pick_tile(S_dec, td_target)
    tk = _tk_override if _tk_override is not None else pick_tile(S_enc, tk_target)

    # Padding-aware (lanes pad to 128) per-folded-batch VMEM footprint.
    def per_batch_bytes(td_, tk_):
        return (2 * tk_ * Hp * isize           # enc blocks (double-buffered)
                + 2 * td_ * Hp * isize         # dec blocks
                + 2 * td_ * Hp * isize         # out blocks
                + td_ * Hp * 4                 # acc scratch (f32)
                + 2 * td_ * 128 * 4            # m / l scratch (lane-padded)
                + 2 * td_ * tk_ * 4)           # scores / probs (f32)

    while per_batch_bytes(td, tk) > budget and tk > sub:
        tk = max(sub, _round_up(tk // 2, sub))
    while per_batch_bytes(td, tk) > budget and td > sub:
        td = max(sub, _round_up(td // 2, sub))

    # Fold batch elements per grid step (amortize ~0.35 us/step) within budget.
    bt = 1
    for cand in range(1, B + 1):
        if B % cand == 0 and cand * per_batch_bytes(td, tk) <= budget:
            bt = cand

    S_dec_p = _round_up(S_dec, td)
    S_enc_p = _round_up(S_enc, tk)
    n_k = S_enc_p // tk

    # Keep at least one "parallel" grid axis >= 2 so both v7x TensorCores get
    # work (negligible cost on single-TC v5e/v6e).
    if B // bt == 1 and S_dec_p // td == 1:
        if B > 1:
            for cand in range(B // 2, 0, -1):
                if B % cand == 0:
                    bt = cand
                    break
        elif S_dec_p > sub:
            td = _round_up(max(sub, S_dec_p // 2), sub)
            S_dec_p = _round_up(S_dec, td)

    # Zero-pad inputs to lane/sublane-dense shapes.
    enc_p = enc_output
    if Hp != H or S_enc_p != S_enc:
        enc_p = jnp.pad(enc_output, ((0, 0), (0, S_enc_p - S_enc), (0, Hp - H)))
    dec_p = dec_output
    if Hp != H or S_dec_p != S_dec:
        dec_p = jnp.pad(dec_output, ((0, 0), (0, S_dec_p - S_dec), (0, Hp - H)))

    mm_dtype = jnp.bfloat16 if (use_bf16_matmul and dtype == jnp.float32) else dtype
    need_mask = S_enc_p != S_enc
    n_dec_tiles = S_dec_p // td

    # enc is re-streamed from HBM once per decoder tile.
    cost = pl.CostEstimate(
        flops=4 * B * S_dec_p * S_enc_p * Hp,               # two matmuls
        transcendentals=B * S_dec_p * S_enc_p,              # exp
        bytes_accessed=(B * S_enc_p * Hp * isize * n_dec_tiles
                        + 2 * B * S_dec_p * Hp * isize),    # dec read + out write
    )
    out_shape = jax.ShapeDtypeStruct((B, S_dec_p, Hp), dtype)

    if n_k == 1:
        # Single encoder tile: plain softmax, no online-softmax machinery.
        kernel = functools.partial(_attn_kernel_single, s_enc=S_enc,
                                   mm_dtype=mm_dtype, need_mask=need_mask)
        grid = (B // bt, n_dec_tiles)
        in_specs = [
            pl.BlockSpec((bt, tk, Hp), lambda b, d: (b, 0, 0)),   # enc
            pl.BlockSpec((bt, td, Hp), lambda b, d: (b, d, 0)),   # dec
        ]
        out_specs = pl.BlockSpec((bt, td, Hp), lambda b, d: (b, d, 0))
        scratch_shapes = []
        dims = ("parallel", "parallel")
    else:
        kernel = functools.partial(_attn_kernel_flash, s_enc=S_enc, tk=tk,
                                   mm_dtype=mm_dtype, need_mask=need_mask)
        grid = (B // bt, n_dec_tiles, n_k)
        enc_block_bytes = bt * tk * Hp * isize
        if enc_block_bytes <= 256 * 1024:
            # Small streamed tiles expose per-k-step DMA latency (worst on
            # v5e's low HBM BW) -> buffer the streamed operand 3-deep.
            enc_spec = pl.BlockSpec((bt, tk, Hp), lambda b, d, k: (b, k, 0),
                                    pipeline_mode=pl.Buffered(3))
        else:
            enc_spec = pl.BlockSpec((bt, tk, Hp), lambda b, d, k: (b, k, 0))
        in_specs = [
            enc_spec,                                              # enc
            pl.BlockSpec((bt, td, Hp), lambda b, d, k: (b, d, 0)),  # dec
        ]
        out_specs = pl.BlockSpec((bt, td, Hp), lambda b, d, k: (b, d, 0))
        scratch_shapes = [
            pltpu.VMEM((bt, td, 1), jnp.float32),    # running max
            pltpu.VMEM((bt, td, 1), jnp.float32),    # running sum
            pltpu.VMEM((bt, td, Hp), jnp.float32),   # running weighted acc
        ]
        dims = ("parallel", "parallel", "arbitrary")

    out_p = pl.pallas_call(
        kernel,
        out_shape=out_shape,
        grid_spec=pltpu.PrefetchScalarGridSpec(
            num_scalar_prefetch=0,
            grid=grid,
            in_specs=in_specs,
            out_specs=out_specs,
            scratch_shapes=scratch_shapes,
        ),
        compiler_params=pltpu.CompilerParams(
            dimension_semantics=dims,
            vmem_limit_bytes=vmem_limit,
        ),
        cost_estimate=cost,
    )(enc_p, dec_p)

    if S_dec_p != S_dec or Hp != H:
        out_p = out_p[:, :S_dec, :H]
    return out_p


# -----------------------------------------------------------------------------
# Reference + test
# -----------------------------------------------------------------------------
def _reference(enc_output, dec_output):
    # Pure-JAX reference mirroring the PyTorch forward (full f32 precision).
    hi = jax.lax.Precision.HIGHEST
    a_t = jnp.einsum("beh,bdh->bed", enc_output, dec_output, precision=hi)
    a_t = jax.nn.softmax(a_t, axis=1)                     # over the enc axis
    return jnp.einsum("bed,beh->bdh", a_t, enc_output, precision=hi)


if __name__ == "__main__":
    key = jax.random.PRNGKey(0)
    k_enc, k_dec, k_enc2, k_dec2 = jax.random.split(key, 4)

    # Case 1: module-natural small shapes (single-encoder-tile fast path;
    # H=32 is lane-padded to 128 inside the wrapper).
    B, S_enc, S_dec, H = 2, 16, 8, 32
    enc = jax.random.normal(k_enc, (B, S_enc, H), dtype=jnp.float32)
    dec = jax.random.normal(k_dec, (B, S_dec, H), dtype=jnp.float32)
    out = jax.block_until_ready(attention(enc, dec))
    ref = _reference(enc, dec)
    assert out.shape == (B, S_dec, H)
    assert jnp.allclose(out, ref, atol=2e-3, rtol=2e-3), "case 1 mismatch"

    # Case 2: force the multi-tile flash path + ragged-S_enc masking
    # (S_enc=20 padded to 24, 3 encoder tiles of 8).
    B2, S_enc2, S_dec2, H2 = 2, 20, 8, 32
    enc2 = jax.random.normal(k_enc2, (B2, S_enc2, H2), dtype=jnp.float32)
    dec2 = jax.random.normal(k_dec2, (B2, S_dec2, H2), dtype=jnp.float32)
    out2 = jax.block_until_ready(
        attention(enc2, dec2, _tk_override=8, _td_override=8))
    ref2 = _reference(enc2, dec2)
    assert out2.shape == (B2, S_dec2, H2)
    assert jnp.allclose(out2, ref2, atol=2e-3, rtol=2e-3), "case 2 mismatch"

    print("KERNEL_OK")
</pallas_src>

<mosaic_0001>
module attributes {stable_mosaic.version = 11 : i64} {
  func.func @_attn_kernel_single(%arg0: i32, %arg1: i32, %arg2: memref<1x16x128xf32, #tpu.memory_space<vmem>>, %arg3: memref<1x8x128xf32, #tpu.memory_space<vmem>>, %arg4: memref<1x8x128xf32, #tpu.memory_space<vmem>>) attributes {dimension_semantics = [#tpu.dimension_semantics<parallel>, #tpu.dimension_semantics<parallel>], iteration_bounds = array<i64: 2, 1>, scalar_prefetch = 0 : i64, scratch_operands = 0 : i64, tpu.core_type = #tpu.core_type<tc>, window_params = [{transform_indices = @transform_0, window_bounds = array<i64: 1, 16, 128>}, {transform_indices = @transform_1, window_bounds = array<i64: 1, 8, 128>}, {transform_indices = @transform_2, window_bounds = array<i64: 1, 8, 128>}]} {
    %c0 = arith.constant 0 : index
    %c0_0 = arith.constant 0 : index
    %c0_1 = arith.constant 0 : index
    %0 = vector.load %arg2[%c0, %c0_0, %c0_1] : memref<1x16x128xf32, #tpu.memory_space<vmem>>, vector<1x16x128xf32>
    %c0_2 = arith.constant 0 : index
    %c0_3 = arith.constant 0 : index
    %c0_4 = arith.constant 0 : index
    %1 = vector.load %arg3[%c0_2, %c0_3, %c0_4] : memref<1x8x128xf32, #tpu.memory_space<vmem>>, vector<1x8x128xf32>
    "tpu.trace_start"() <{level = 10 : i32, message = "bdh,beh->bde"}> : () -> ()
    %cst = arith.constant dense<0.000000e+00> : vector<1x8x16xf32>
    %2 = tpu.matmul %1, %0, %cst {dimension_numbers = #tpu.dot_dimension_numbers<[2], [2], [1], [1], [0, 0, 0, 1, 1, 1], [0], [0]>} : vector<1x8x128xf32>, vector<1x16x128xf32>, vector<1x8x16xf32> -> vector<1x8x16xf32>
    "tpu.trace_stop"() : () -> ()
    %cst_5 = arith.constant dense<0xFF800000> : vector<1x8xf32>
    %3 = vector.multi_reduction <maximumf>, %2, %cst_5 [2] : vector<1x8x16xf32> to vector<1x8xf32>
    %4 = vector.shape_cast %3 : vector<1x8xf32> to vector<1x8x1xf32>
    %5 = vector.broadcast %4 : vector<1x8x1xf32> to vector<1x8x16xf32>
    %6 = arith.subf %2, %5 : vector<1x8x16xf32>
    %7 = math.exp %6 : vector<1x8x16xf32>
    %cst_6 = arith.constant dense<0.000000e+00> : vector<1x8xf32>
    %8 = vector.multi_reduction <add>, %7, %cst_6 [2] : vector<1x8x16xf32> to vector<1x8xf32>
    %9 = vector.shape_cast %8 : vector<1x8xf32> to vector<1x8x1xf32>
    "tpu.trace_start"() <{level = 10 : i32, message = "bde,beh->bdh"}> : () -> ()
    %cst_7 = arith.constant dense<0.000000e+00> : vector<1x8x128xf32>
    %10 = tpu.matmul %7, %0, %cst_7 {dimension_numbers = #tpu.dot_dimension_numbers<[2], [1], [1], [2], [0, 0, 0, 1, 1, 2], [0], [0]>} : vector<1x8x16xf32>, vector<1x16x128xf32>, vector<1x8x128xf32> -> vector<1x8x128xf32>
    "tpu.trace_stop"() : () -> ()
    %11 = vector.broadcast %9 : vector<1x8x1xf32> to vector<1x8x128xf32>
    %12 = arith.divf %10, %11 : vector<1x8x128xf32>
    %c0_8 = arith.constant 0 : index
    %c0_9 = arith.constant 0 : index
    %c0_10 = arith.constant 0 : index
    %13 = vector.load %arg4[%c0_8, %c0_9, %c0_10] : memref<1x8x128xf32, #tpu.memory_space<vmem>>, vector<1x8x128xf32>
    tpu.vector_store %arg4[%c0_8, %c0_9, %c0_10], %12 {strides = array<i32>} : memref<1x8x128xf32, #tpu.memory_space<vmem>>, vector<1x8x128xf32>,
    return
  }
  func.func @transform_0(%arg0: i32, %arg1: i32) -> (i32, i32, i32) {
    %c0_i32 = arith.constant 0 : i32
    %c0_i32_0 = arith.constant 0 : i32
    %c0_i32_1 = arith.constant 0 : i32
    return %arg0, %c0_i32, %c0_i32_0 : i32, i32, i32
  }
  func.func @transform_1(%arg0: i32, %arg1: i32) -> (i32, i32, i32) {
    %c0_i32 = arith.constant 0 : i32
    %c0_i32_0 = arith.constant 0 : i32
    return %arg0, %arg1, %c0_i32 : i32, i32, i32
  }
  func.func @transform_2(%arg0: i32, %arg1: i32) -> (i32, i32, i32) {
    %c0_i32 = arith.constant 0 : i32
    %c0_i32_0 = arith.constant 0 : i32
    return %arg0, %arg1, %c0_i32 : i32, i32, i32
  }
}

</mosaic_0001>

<bundles_post_ra>
// kernel: tpu_custom_call.1
= control target key start
LH: loop header
LB: loop body
LE: loop exit
PB: predicated region body
PF: predicated region fallthrough
CT: control target
= control target key end

     0   :  { %7 = vsyncpa [#allocation3], 0  ;;  %s1004_s0 = inlined_call_operand.hbm [shape: f32[2,16,128], index: 0, kind: input, shape index: {}]   ;;  %s1005_s1 = inlined_call_operand.hbm [shape: f32[2,8,128], index: 1, kind: input, shape index: {}]   ;;  %s1006_s2 = inlined_call_operand.hbm [shape: f32[2,8,128], index: 2, kind: output, shape index: {}]  }
   0x1   :  { %9 = vsyncpa [#allocation3 + $0x1], 0 }
   0x2   :  { %10 = vsyncpa [#allocation6], 0 }
   0x3   :  { %12 = vsyncpa [#allocation6 + $0x1], 0 }
   0x4   :  { %13 = vsyncpa [#allocation4], 0 }
   0x5   :  { %15 = vsyncpa [#allocation4 + $0x1], 0  ;;  %s785_s9 = smov 0   ;;  %s787_s10 = smov 0  }
   0x6   :  { %s789_s11 = smov 0   ;;  %s791_s12 = smov 0  }
   0x7   :  { %s793_s13 = smov 0   ;;  %s795_s14 = smov 0  }
   0x8 LB: > { %s493_s15 = sadd.s32 4294967295, %s760_s14   ;;  %s494_s16 = sadd.s32 4294967294, %s760_s14   ;;  %s760_s14 = sphi %s795_s14, %s21_s14   ;;  %s756_s13 = sphi %s793_s13, %s1025_s13   ;;  %s752_s12 = sphi %s791_s12, %s1024_s12   ;;  %s748_s11 = sphi %s789_s11, %s1023_s11   ;;  %s744_s10 = sphi %s787_s10, %s1022_s10   ;;  %s740_s9 = sphi %s785_s9, %s1021_s9  }
   0x9   : > { %s33_s17 = sadd.s32 1, %s756_s13  ;;  %s40_s18 = sadd.s32 1, %s748_s11 }
   0xa   : > { %p35_p0 = scmp.ge.s32.totalorder %s33_s17, 2  ;;  %p47_p1 = scmp.ne.s32.totalorder %s748_s11, %s744_s10 }
   0xb   : > { %p48_p2 = scmp.eq.s32.totalorder %s760_s14, 0  ;;  %p53_p3 = scmp.ne.s32.totalorder %s744_s10, %s740_s9 }
   0xc   : > { %s1027_s17 = smov (%p35_p0, %s33_s17), 0  ;;  %p54_p5 = scmp.eq.s32.totalorder %s493_s15, 0 }
   0xd   : > { %p826_p4 = por %p48_p2, %p47_p1  ;;  %s37_s20 = ssub.s32 %s756_s13, %s1027_s17 }
   0xe   : > { %p107_p6 = scmp.eq.s32.totalorder %s493_s15, 1  ;;  %p38_p7 = scmp.eq.s32.totalorder %s37_s20, 0 }
   0xf   : > { %p832_p8 = por %p54_p5, %p53_p3  ;;  %p113_p10 = scmp.eq.s32.totalorder %s494_s16, 1 }
  0x10   : > { %p836_p9 = por %p107_p6, %p47_p1  ;;  %p555_p13 = scmp.lt.s32.totalorder %s760_s14, 2 }
  0x11   : > { %s1010_s21 = scalar_select %p832_p8, 1, 0 }
  0x12   : > { %s1011_s22 = scalar_select %p836_p9, 1, 0 }
  0x13   : > { %s841_s23 = scalar_select %p38_p7, %s748_s11, %s40_s18  }
  0x14   : > { %p843_p11 = por %p113_p10, %p53_p3  ;;  %s850_s25 = sand.u32 1, %s748_s11  }
  0x15   : > { %s497_s26 = sshll.u32 %s850_s25, 4  ;;  %s511_s27 = sshll.u32 %s756_s13, 8 }
  0x16   : > { %s1012_s24 = scalar_select %p843_p11, 1, 0 }
  0x17   : > { %s857_s30 = scalar_lea.hbm %s1004_s0, %s511_s27  ;;  %s137_s3 = scalar_lea.vmem [#allocation2], %s497_s26 }
  0x18   : > { %s144_s4 = sshll.u32 %s137_s3, 4  ;;  %p863_p0 = pnand %p555_p13, %p826_p4  ;;  %s859_s4 = int_to_ptr.vmem [resolvable:$true] %s144_s4 }
  0x19   : > { %s134_s6 = scalar_lea.sflag [#allocation3], %s850_s25  ;;  %s614_s7 = scalar_lea.hbm %s857_s30, 256 }
  0x1a   : > { %p615_p2 = scmp.ne.s32.totalorder %s857_s30, %s614_s7  ;;  %p616_p3 = pneg %p863_p0 }
  0x1b   : > { %s619_s16 = scalar_lea.hbm %s1004_s0, 512  ;;  %p620_p4 = scmp.lt.u32.totalorder %s857_s30, %s1004_s0 }
  0x1c   : > { %p617_p5 = pnand %p616_p3, %p615_p2  ;;  %p621_p7 = scmp.lt.u32.totalorder %s619_s16, %s614_s7 }
  0x1d   : > { %p623_p13 = scmp.lt.u32.totalorder %s614_s7, %s857_s30 }
  0x1e   : > { %p618_p6 = pneg %p617_p5  ;;  %p622_p10 = por %p621_p7, %p620_p4 }
  0x20   : > { %p624_p12 = por %p623_p13, %p622_p10 }
  0x22   : > { %p625_p1 = pnand %p624_p12, %p618_p6 }
  0x24   : > { %628 = shalt.err (!%p625_p1)
}
  0x25   : > { %s629_s20 = scalar_lea.vmem %s859_s4, 256  ;;  %s762_s26 = smov [#allocation2]  }
  0x26   : > { %p630_p2 = scmp.ne.s32.totalorder %s859_s4, %s629_s20  ;;  %s634_s27 = sshll.u32 %s762_s26, 4  ;;  %s635_s27 = int_to_ptr.vmem [resolvable:$false] %s634_s27 }
  0x27   : > { %s636_s28 = scalar_lea.vmem %s635_s27, 512  ;;  %p637_p9 = scmp.lt.s32.totalorder %s859_s4, %s635_s27 }
  0x28   : > { %p632_p5 = pnand %p630_p2, %p616_p3  ;;  %p638_p4 = scmp.lt.s32.totalorder %s636_s28, %s629_s20 }
  0x2a   : > { %p633_p11 = pneg %p632_p5  ;;  %p639_p7 = por %p638_p4, %p637_p9 }
  0x2c   : > { %p640_p10 = pnand %p639_p7, %p633_p11 }
  0x2e   : > { %643 = shalt.err (!%p640_p10)
}
  0x2f   : > { %s763_s29 = smov 128   ;;  %s764_s3 = smov 8  }
  0x30   : > { %547 = dma.hbm_to_vmem [thread:$0]  (!%p863_p0), %s857_s30, 256, %s859_s4, %s134_s6, %s763_s29, %s763_s29, %s764_s3  }
  0x31   : > { %p171_p12 = scmp.lt.s32.totalorder %s760_s14, 3  ;;  %s500_s7 = sshll.u32 %s850_s25, 3 }
  0x32   : > { %s501_s8 = sshll.u32 %s756_s13, 7  ;;  %p1014_p9 = scmp.ge.s32.totalorder %s760_s14, 1 }
  0x33   : > { %s908_s19 = scalar_lea.hbm %s1005_s1, %s501_s8  ;;  %s158_s20 = scalar_lea.vmem [#allocation5], %s500_s7 }
  0x34   : > { %p901_p11 = pnand %p1014_p9, %p171_p12  ;;  %s166_s26 = sshll.u32 %s158_s20, 4  ;;  %s167_s26 = int_to_ptr.vmem [resolvable:$true] %s166_s26 }
  0x35   : > { %s155_s30 = scalar_lea.sflag [#allocation6], %s850_s25  ;;  %s644_s4 = scalar_lea.hbm %s908_s19, 128 }
  0x36   : > { %s1015_s15 = scalar_select %p901_p11, 1, 0 }
  0x37   : > { %p645_p1 = scmp.ne.s32.totalorder %s908_s19, %s644_s4  ;;  %s649_s28 = scalar_lea.hbm %s1005_s1, 256 }
  0x38   : > { %p650_p2 = scmp.lt.u32.totalorder %s908_s19, %s1005_s1  ;;  %p651_p5 = scmp.lt.u32.totalorder %s649_s28, %s644_s4 }
  0x39   : > { %p647_p6 = pnand %p645_p1, %p616_p3  ;;  %p653_p7 = scmp.lt.u32.totalorder %s644_s4, %s908_s19 }
  0x3a   : > { %p652_p4 = por %p651_p5, %p650_p2 }
  0x3b   : > { %p648_p13 = pneg %p647_p6 }
  0x3c   : > { %p654_p10 = por %p653_p7, %p652_p4 }
  0x3e   : > { %p655_p12 = pnand %p654_p10, %p648_p13 }
  0x40   : > { %658 = shalt.err (!%p655_p12)
}
  0x41   : > { %s659_s25 = scalar_lea.vmem %s167_s26, 128  ;;  %s765_s7 = smov [#allocation5]  }
  0x42   : > { %p660_p9 = scmp.ne.s32.totalorder %s167_s26, %s659_s25  ;;  %s664_s8 = sshll.u32 %s765_s7, 4  ;;  %s665_s8 = int_to_ptr.vmem [resolvable:$false] %s664_s8 }
  0x43   : > { %s666_s16 = scalar_lea.vmem %s665_s8, 256  ;;  %p667_p8 = scmp.lt.s32.totalorder %s167_s26, %s665_s8 }
  0x44   : > { %p662_p1 = pnand %p660_p9, %p616_p3  ;;  %p668_p11 = scmp.lt.s32.totalorder %s666_s16, %s659_s25 }
  0x46   : > { %p663_p6 = pneg %p662_p1  ;;  %p669_p2 = por %p668_p11, %p667_p8 }
  0x48   : > { %p670_p5 = pnand %p669_p2, %p663_p6 }
  0x4a   : > { %673 = shalt.err (!%p670_p5)
}
  0x4b   : > { %550 = dma.hbm_to_vmem [thread:$0]  (!%p863_p0), %s908_s19, 128, %s167_s26, %s155_s30  }
  0x4c   : > { %p1016_p13 = scmp.ne.s32.totalorder %s1015_s15, 0 }
  0x4d   : > { %s933_s18 = sand.u32 (!%p1016_p13), 1, %s744_s10   ;;  %p1017_p3 = scmp.ne.s32.totalorder (!%p1016_p13), %s1010_s21, 0 }
  0x4e   : > { %175 = sbr.rel (%p1016_p13) target bundleno = 697 (0x2b9), region = 28  ;;  %s503_s20 = sshll.u32 (!%p1016_p13), %s933_s18, 4 }
  0x4f   : > { %s178_s4 = scalar_lea.sflag (!%p1016_p13), [#allocation3], %s933_s18  ;;  %s181_s6 = scalar_lea.vmem (!%p1016_p13), [#allocation2], %s503_s20 }
  0x55   : > { %727 = dma.done.wait (%p1017_p3), %s178_s4, 256  }
  0x56   : > { %729 = vsyncadd (%p1017_p3), %s178_s4, 4294967040  ;;  %s504_s5 = sshll.u32 %s933_s18, 3  ;;  %s187_s15 = scalar_lea.sflag [#allocation6], %s933_s18 }
  0x57   : > { %s190_s19 = scalar_lea.vmem [#allocation5], %s504_s5 }
  0x58   : > { %731 = dma.done.wait (%p1017_p3), %s187_s15, 128  }
  0x59   : > { %733 = vsyncadd (%p1017_p3), %s187_s15, 4294967168  ;;  %v766_v0 = vmov 0.0|0.0   ;;  %vm767_vm0 = vmmov 0   ;;  %v768_v1 = vmov 0.0   ;;  %v216_v2 = vld [vmem:[%s181_s6] sm:$0xff]  ;;  %v217_v3 = vld [vmem:[%s181_s6 + $0x8] sm:$0xff] }
  0x5a   : > { %532 = vmatprep.subr.bf16.mxu0 %v766_v0  ;;  %522 = vmatprep.mubr.msk.f32.mxu0 %vm767_vm0, %v768_v1  ;;  %v533_v4 = vpack.c.bf16 %v217_v3, %v216_v2  ;;  %v218_v5 = vld [vmem:[%s190_s19] sm:$0xff]  ;;  %vm289_vm1 = vcmask 130048   ;;  %s508_s21 = sshll.u32 %s752_s12, 7  ;;  %s215_s26 = scalar_lea.vmem [#allocation7], %s504_s5 }
  0x5b   : > { %535 = vmatprep.subr.bf16.mxu1 %v766_v0  ;;  %529 = vmatprep.mubr.msk.f32.mxu1 %vm767_vm0, %v768_v1  ;;  %s390_s30 = sshll.u32 %s215_s26, 4  ;;  %s955_s29 = scalar_lea.hbm %s1006_s2, %s508_s21  ;;  %s957_s30 = int_to_ptr.vmem [resolvable:$true] %s390_s30 }
  0x5c   : > { %534 = vmatpush3.bf16.xpose.msra.mxu0 %v533_v4  ;;  %537 = vmatpush3.bf16.msra.mxu1 %v533_v4  ;;  %s376_s3 = scalar_lea.sflag [#allocation4], %s933_s18  ;;  %s674_s12 = scalar_lea.vmem %s957_s30, 128 }
  0x5d   : > { %p675_p8 = scmp.ne.s32.totalorder %s957_s30, %s674_s12  ;;  %p1018_p0 = scmp.ne.s32.totalorder %s1011_s22, 0 }
  0x5e   : > { %s769_s25 = smov [#allocation7]  }
  0x5f   : > { %p676_p11 = pnand %p675_p8, %p1018_p0  ;;  %s678_s7 = sshll.u32 %s769_s25, 4  ;;  %s679_s7 = int_to_ptr.vmem [resolvable:$false] %s678_s7 }
  0x60   : > { %s680_s8 = scalar_lea.vmem %s679_s7, 256  ;;  %p681_p7 = scmp.lt.s32.totalorder %s957_s30, %s679_s7 }
  0x61   : > { %p677_p4 = pneg %p676_p11  ;;  %p682_p10 = scmp.lt.s32.totalorder %s680_s8, %s674_s12 }
  0x63   : > { %523 = vmatmul.mubr.f32.vlgmr.msra.gmra.mrb[0].mxu0 %v218_v5  ;;  %p683_p12 = por %p682_p10, %p681_p7 }
  0x65   : > { %p684_p9 = pnand %p683_p12, %p677_p4 }
 0x136   : > { %v285_v6 = vpop.f32.mrb[0].mxu0 }
 0x137   : > { %v524_v7 = vpop.f32.mrb[1].mxu0  ;;  %v290_v8 = vsel %vm289_vm1, %v285_v6, -inf }
 0x138   : > { %291 = vmax.xlane.f32.xlu0 %v290_v8 }
 0x1c5   : > { %v292_v9 = vpop.xlane.xlu0 %291 }
 0x1c6   : > { %v293_v10 = vsub.f32 %v285_v6, %v292_v9 }
 0x1c8   : > { %v294_v11 = vmul.f32 1.442695, %v293_v10 }
 0x1ca   : > { %610 = vpow2.f32 %v294_v11 }
 0x1d4   : > { %v611_v12 = vpop.eup %610 }
 0x1d5   : > { %530 = vmatmul.mubr.msk.f32.vlgmr.msra.gmra.mrb[0].mxu1 %vm289_vm1, %v611_v12  ;;  %v296_v13 = vsel %vm289_vm1, %v611_v12, 0.0 }
 0x1d6   : > { %297 = vadd.xlane.f32.xlu0 %v296_v13 }
 0x263   : > { %v298_v14 = vpop.xlane.xlu0 %297 }
 0x264   : > { %612 = vrcp.f32 %v298_v14 }
 0x26e   : > { %v613_v15 = vpop.eup %612 }
 0x2a8   : > { %v368_v16 = vpop.f32.mrb[0].mxu1 }
 0x2a9   : > { %v373_v17 = vmul.f32 %v613_v15, %v368_v16  ;;  %v531_v18 = vpop.f32.mrb[1].mxu1 }
 0x2ab   : > { %374 = vst [vmem:[%s215_s26] sm:$0xff] %v373_v17 }
 0x2ac   : > { %687 = shalt.err (!%p684_p9)
}
 0x2ad   : > { %s688_s16 = scalar_lea.hbm %s955_s29, 128  ;;  %s692_s4 = scalar_lea.hbm %s1006_s2, 256 }
 0x2ae   : > { %p689_p1 = scmp.ne.s32.totalorder %s955_s29, %s688_s16  ;;  %p693_p5 = scmp.lt.u32.totalorder %s955_s29, %s1006_s2 }
 0x2af   : > { %p694_p13 = scmp.lt.u32.totalorder %s692_s4, %s688_s16  ;;  %p696_p8 = scmp.lt.u32.totalorder %s688_s16, %s955_s29 }
 0x2b0   : > { %p690_p6 = pnand %p689_p1, %p1018_p0 }
 0x2b1   : > { %p695_p3 = por %p694_p13, %p693_p5 }
 0x2b2   : > { %p691_p2 = pneg %p690_p6 }
 0x2b3   : > { %p697_p11 = por %p696_p8, %p695_p3 }
 0x2b5   : > { %p698_p4 = pnand %p697_p11, %p691_p2 }
 0x2b7   : > { %701 = shalt.err (!%p698_p4)
}
 0x2b8   : > { %542 = dma.vmem_to_hbm [thread:$0]  (%p1018_p0), %s957_s30, 128, %s955_s29, %s376_s3  }
 0x2b9 PF: > { %s402_s15 = sand.u32 1, %s740_s9   ;;  %p1019_p7 = scmp.ne.s32.totalorder %s1012_s24, 0 }
 0x2ba   : > { %p1020_p10 = scmp.ge.s32.totalorder %s760_s14, 2  ;;  %s403_s19 = scalar_lea.sflag [#allocation4], %s402_s15 }
 0x2bc   : > { %p552_p12 = pnand %p1020_p10, %p1019_p7 }
 0x2be   : > { %735 = dma.done.wait (!%p552_p12), %s403_s19, 128  }
 0x2bf   : > { %737 = vsyncadd (!%p552_p12), %s403_s19, 4294967168  ;;  %s21_s14 = sadd.s32 1, %s760_s14   ;;  %s1021_s9 = smov %s744_s10 }
 0x2c0   : > { %p18_p9 = scmp.ge.s32.totalorder %s21_s14, 4   ;;  %s1022_s10 = smov %s748_s11 }
 0x2c1   : > { %s1023_s11 = smov %s841_s23  ;;  %s1024_s12 = smov %s756_s13 }
 0x2c2   : > { %s1025_s13 = smov %s1027_s17  ;;  %20 = sbr.rel (!%p18_p9) target bundleno = 8 (0x8), region = 86 }
 0x2c9   :  { %408 = vsyncpa [#allocation3], 1 }
 0x2ca   :  { %410 = vsyncpa [#allocation3 + $0x1], 1 }
 0x2cb   :  { %411 = vsyncpa [#allocation6], 1 }
 0x2cc   :  { %413 = vsyncpa [#allocation6 + $0x1], 1 }
 0x2cd   :  { %414 = vsyncpa [#allocation4], 1 }
 0x2ce   :  { %416 = vsyncpa [#allocation4 + $0x1], 1 }

</bundles_post_ra>
